<compile_context>
chip_gen: v7x
topology: tpu7x:2x2x1
jax: 0.10.0
libtpu: 0.0.40
codegen_flags: <defaults>
</compile_context>

<pallas_src>
import functools

import numpy as np
import jax
import jax.numpy as jnp
from jax.experimental import pallas as pl
from jax.experimental.pallas import tpu as pltpu


# ----------------------------------------------------------------------------
# Pallas kernels
# ----------------------------------------------------------------------------

def _matmul_kernel(x_ref, w_ref, o_ref):
    o_ref[...] = jnp.dot(x_ref[...], w_ref[...],
                         preferred_element_type=jnp.float32).astype(o_ref.dtype)


def _qkv_kernel(x_ref, wq_ref, wk_ref, wv_ref, q_ref, k_ref, v_ref):
    # Row tile of the q/k/v projections.  Weights are resident (constant index
    # maps); activations arrive pre-cast to the MXU compute dtype.
    x = x_ref[...]
    for w_ref, o_ref in ((wq_ref, q_ref), (wk_ref, k_ref), (wv_ref, v_ref)):
        o_ref[...] = jnp.dot(
            x, w_ref[...], preferred_element_type=jnp.float32).astype(o_ref.dtype)


def _attn_kernel(q_ref, k_ref, v_ref, rk_ref, rwb_ref, rrb_ref, mask_ref,
                 o_ref, *prob_refs, scale, head_blk, d_head, compute_dtype,
                 exact_recip):
    # One (batch, head-block) tile:
    #   q_ref/k_ref/v_ref: (Q, TH*Dh)   head projections (compute dtype)
    #   rk_ref:            (R, TH*Dh)   relative-key projection
    #   rwb_ref/rrb_ref:   (1, TH*Dh)   r_w_bias / r_r_bias (f32)
    #   mask_ref:          (Q, K)       attention mask (>0 == masked, f32)
    #   o_ref:             (Q, TH*Dh)   attention output (lane-dense)
    #   prob_refs[0]:      (TH, Q, K)   optional softmax probabilities (f32)
    f32 = jnp.float32
    Q = q_ref.shape[0]
    K = k_ref.shape[0]
    Dh = d_head
    neg = jnp.finfo(f32).min

    masked = mask_ref[...] > 0.0                                    # (Q, K)
    row = jax.lax.broadcasted_iota(jnp.int32, (Q, K), 0)
    col = jax.lax.broadcasted_iota(jnp.int32, (Q, K), 1)
    lshift = (K - 1) - row                                          # per-row rotation

    nt = (((1,), (1,)), ((), ()))                                   # x @ y^T
    nn = (((1,), (0,)), ((), ()))                                   # x @ y

    for h in range(head_blk):                                       # static loop
        c0, c1 = h * Dh, (h + 1) * Dh
        qh = q_ref[:, c0:c1].astype(f32)                            # (Q, Dh)
        # fold 1/sqrt(d_head) into q (applies to AC and BD, like score*scale)
        qw = ((qh + rwb_ref[:, c0:c1]) * scale).astype(compute_dtype)
        qr = ((qh + rrb_ref[:, c0:c1]) * scale).astype(compute_dtype)

        ac = jax.lax.dot_general(qw, k_ref[:, c0:c1], nt,
                                 preferred_element_type=f32)        # (Q, K)
        bd = jax.lax.dot_general(qr, rk_ref[:, c0:c1], nt,
                                 preferred_element_type=f32)        # (Q, R=K)

        # exact in-VMEM _rel_shift (rlen == klen == qlen):
        #   out[i,j] = bd[i, K-1-i+j]  (j <= i)
        #            = 0               (j == i+1)
        #            = bd[i+1, j-i-2]  (j >= i+2)
        y = bd
        step = 1
        while step < K:                                             # log2(K) rolls
            y = jnp.where((lshift & step) != 0, jnp.roll(y, -step, axis=1), y)
            step *= 2
        y_next = jnp.roll(y, -1, axis=0)                            # y_next[i] = y[i+1]
        bd_s = jnp.where(col <= row, y,
                         jnp.where(col == row + 1, 0.0, y_next))

        score = jnp.where(masked, neg, ac + bd_s)                   # scale folded in
        m = jnp.max(score, axis=-1, keepdims=True)
        e = jnp.exp(score - m)
        s = jnp.sum(e, axis=-1, keepdims=True)
        if exact_recip:
            p = e / s
        else:
            p = e * pl.reciprocal(s, approx=True)                   # EUP slot

        # NOTE: dropatt / head_mask are identity in the eval/default path.
        pv = jax.lax.dot_general(p.astype(compute_dtype), v_ref[:, c0:c1], nn,
                                 preferred_element_type=f32)        # (Q, Dh)
        o_ref[:, c0:c1] = pv.astype(o_ref.dtype)
        if prob_refs:
            prob_refs[0][h] = p


def _outproj_ff_kernel(vec_ref, x_ref, wo_ref, ln1g_ref, ln1b_ref,
                       w1_ref, b1_ref, w2_ref, b2_ref,
                       ln2g_ref, ln2b_ref, out_ref, *, eps):
    # Row tile: o_net + residual + LayerNorm, then PositionwiseFF (post-lnorm)
    # + LayerNorm.  Resident compute-dtype weights, f32 math/accumulation.
    f32 = jnp.float32
    cdt = wo_ref.dtype

    attn_out = jnp.dot(vec_ref[...], wo_ref[...], preferred_element_type=f32)
    x = x_ref[...] + attn_out
    mu = jnp.mean(x, axis=-1, keepdims=True)
    var = jnp.mean(jnp.square(x - mu), axis=-1, keepdims=True)
    y = (x - mu) * jax.lax.rsqrt(var + eps) * ln1g_ref[...] + ln1b_ref[...]

    h = jnp.maximum(
        jnp.dot(y.astype(cdt), w1_ref[...], preferred_element_type=f32)
        + b1_ref[...], 0.0)
    core = jnp.dot(h.astype(cdt), w2_ref[...], preferred_element_type=f32) + b2_ref[...]
    z = y + core
    mu2 = jnp.mean(z, axis=-1, keepdims=True)
    var2 = jnp.mean(jnp.square(z - mu2), axis=-1, keepdims=True)
    out_ref[...] = ((z - mu2) * jax.lax.rsqrt(var2 + eps)
                    * ln2g_ref[...] + ln2b_ref[...]).astype(out_ref.dtype)


# ----------------------------------------------------------------------------
# Wrapper
# ----------------------------------------------------------------------------

def _row_block(m, target=256):
    for t in range(min(m, target), 0, -1):
        if m % t == 0 and (t % 8 == 0 or t == m):
            return t
    return m


def _pick_head_block(n_head, d_head, qlen, klen, itemsize, budget_bytes=8 << 20):
    # Largest head block that keeps the per-step VMEM working set small while
    # satisfying the (8, 128) lane rule (TH*Dh multiple of 128, or all heads).
    candidates = [t for t in range(1, n_head + 1)
                  if n_head % t == 0 and (t == n_head or (t * d_head) % 128 == 0)]

    def est(t):
        blk = t * d_head * itemsize
        io = 2 * (3 * qlen * blk + klen * blk + qlen * blk)  # dbl-buffered q/k/v/rk/out
        tmp = 6 * qlen * klen * 4                            # live f32 score temporaries
        return io + tmp

    fitting = [t for t in candidates if est(t) <= budget_bytes]
    return max(fitting) if fitting else min(candidates)


def rel_partial_learnable_decoder_layer(dec_inp, r, params, *, n_head, d_head,
                                        dec_attn_mask=None,
                                        output_attentions=False,
                                        compute_dtype=jnp.bfloat16,
                                        row_block=256, head_block=None,
                                        vmem_limit_bytes=64 * 1024 * 1024):
    Q, B, D = dec_inp.shape
    R = r.shape[0]
    H, Dh = n_head, d_head
    HDh = H * Dh
    K = Q  # klen == qlen when mems is None
    assert R == K, "rlen must equal klen == qlen (mems=None path)"
    M = B * Q
    scale = 1.0 / (d_head ** 0.5)
    eps = float(params["layer_norm_epsilon"])
    f32 = jnp.float32
    cdt = compute_dtype
    itemsize = jnp.dtype(cdt).itemsize
    exact_recip = jnp.dtype(cdt) == jnp.dtype(jnp.float32)

    TM = _row_block(M, row_block)
    TH = head_block or _pick_head_block(H, Dh, Q, K, itemsize)
    assert H % TH == 0 and (TH == H or (TH * Dh) % 128 == 0)
    Hb = H // TH

    # batch-major activations: the single boundary transpose attention needs;
    # everything between pallas_calls after this is free reshapes only.
    x2 = dec_inp.transpose(1, 0, 2).reshape(M, D).astype(f32)   # residual (f32)
    x2c = x2.astype(cdt)                                        # matmul copy

    # weights: cast once to the compute dtype, transpose to (in, out)
    w_qkv = params["w_qkv"]
    wq_t = w_qkv[:HDh].T.astype(cdt)            # (D, HDh)
    wk_t = w_qkv[HDh:2 * HDh].T.astype(cdt)     # (D, HDh)
    wv_t = w_qkv[2 * HDh:].T.astype(cdt)        # (D, HDh)
    wr_t = params["w_r"].T.astype(cdt)          # (D, HDh)
    wo_t = params["w_o"].T.astype(cdt)          # (HDh, D)
    w1_t = params["ff_w1"].T.astype(cdt)        # (D, Di)
    w2_t = params["ff_w2"].T.astype(cdt)        # (Di, D)
    Di = w1_t.shape[1]

    row_params = pltpu.CompilerParams(dimension_semantics=("parallel",),
                                      vmem_limit_bytes=vmem_limit_bytes)

    # ---- qkv projection: row-tiled, resident weights, lane-dense outputs ----
    q2, k2, v2 = pl.pallas_call(
        _qkv_kernel,
        grid=(M // TM,),
        in_specs=[pl.BlockSpec((TM, D), lambda i: (i, 0)),
                  pl.BlockSpec((D, HDh), lambda i: (0, 0)),
                  pl.BlockSpec((D, HDh), lambda i: (0, 0)),
                  pl.BlockSpec((D, HDh), lambda i: (0, 0))],
        out_specs=(pl.BlockSpec((TM, HDh), lambda i: (i, 0)),
                   pl.BlockSpec((TM, HDh), lambda i: (i, 0)),
                   pl.BlockSpec((TM, HDh), lambda i: (i, 0))),
        out_shape=(jax.ShapeDtypeStruct((M, HDh), cdt),
                   jax.ShapeDtypeStruct((M, HDh), cdt),
                   jax.ShapeDtypeStruct((M, HDh), cdt)),
        compiler_params=row_params,
    )(x2c, wq_t, wk_t, wv_t)

    q3 = q2.reshape(B, Q, HDh)
    k3 = k2.reshape(B, Q, HDh)
    v3 = v2.reshape(B, Q, HDh)

    # ---- relative-position key projection (small, single block) ----
    r_head_k = pl.pallas_call(
        _matmul_kernel,
        out_shape=jax.ShapeDtypeStruct((R, HDh), cdt),
    )(r.astype(cdt), wr_t)

    rwb = params["r_w_bias"].astype(f32).reshape(1, HDh)
    rrb = params["r_r_bias"].astype(f32).reshape(1, HDh)

    # ---- attention mask: (1 or B, Q, K) f32, >0 means masked ----
    if dec_attn_mask is None:
        mask3 = jnp.zeros((1, Q, K), f32)
    else:
        m = dec_attn_mask.astype(f32)
        if m.ndim == 2:
            mask3 = m[None]
        elif m.ndim == 3:
            mask3 = jnp.transpose(m, (2, 0, 1))
        else:
            raise NotImplementedError("unsupported dec_attn_mask rank")
    Bm = mask3.shape[0]
    if Bm == B:
        mask_index = lambda b, hb: (b, 0, 0)
    elif Bm == 1:
        mask_index = lambda b, hb: (0, 0, 0)
    else:
        raise NotImplementedError("dec_attn_mask batch dim must be 1 or bsz")

    # ---- fused scores + rel_shift + softmax + P@V, grid=(batch, head_block) ----
    in_specs = [
        pl.BlockSpec((None, Q, TH * Dh), lambda b, hb: (b, 0, hb)),   # q
        pl.BlockSpec((None, Q, TH * Dh), lambda b, hb: (b, 0, hb)),   # k
        pl.BlockSpec((None, Q, TH * Dh), lambda b, hb: (b, 0, hb)),   # v
        pl.BlockSpec((R, TH * Dh), lambda b, hb: (0, hb)),            # r_head_k
        pl.BlockSpec((1, TH * Dh), lambda b, hb: (0, hb)),            # r_w_bias
        pl.BlockSpec((1, TH * Dh), lambda b, hb: (0, hb)),            # r_r_bias
        pl.BlockSpec((None, Q, K), mask_index),                       # mask
    ]
    out_specs = [pl.BlockSpec((None, Q, TH * Dh), lambda b, hb: (b, 0, hb))]
    out_shapes = [jax.ShapeDtypeStruct((B, Q, HDh), cdt)]
    if output_attentions:
        out_specs.append(pl.BlockSpec((None, TH, Q, K), lambda b, hb: (b, hb, 0, 0)))
        out_shapes.append(jax.ShapeDtypeStruct((B, H, Q, K), f32))

    attn_res = pl.pallas_call(
        functools.partial(_attn_kernel, scale=scale, head_blk=TH, d_head=Dh,
                          compute_dtype=cdt, exact_recip=exact_recip),
        grid=(B, Hb),
        in_specs=in_specs,
        out_specs=tuple(out_specs) if output_attentions else out_specs[0],
        out_shape=tuple(out_shapes) if output_attentions else out_shapes[0],
        compiler_params=pltpu.CompilerParams(
            dimension_semantics=("parallel", "parallel"),
            vmem_limit_bytes=vmem_limit_bytes),
    )(q3, k3, v3, r_head_k, rwb, rrb, mask3)

    if output_attentions:
        attn_vec, attn_prob = attn_res
    else:
        attn_vec = attn_res

    vec2 = attn_vec.reshape(M, HDh)        # free reshape, already lane-dense

    # ---- o_net + residual + LN1 + PositionwiseFF + LN2 (row-tiled) ----
    out2 = pl.pallas_call(
        functools.partial(_outproj_ff_kernel, eps=eps),
        grid=(M // TM,),
        in_specs=[
            pl.BlockSpec((TM, HDh), lambda i: (i, 0)),
            pl.BlockSpec((TM, D), lambda i: (i, 0)),
            pl.BlockSpec((HDh, D), lambda i: (0, 0)),
            pl.BlockSpec((1, D), lambda i: (0, 0)),
            pl.BlockSpec((1, D), lambda i: (0, 0)),
            pl.BlockSpec((D, Di), lambda i: (0, 0)),
            pl.BlockSpec((1, Di), lambda i: (0, 0)),
            pl.BlockSpec((Di, D), lambda i: (0, 0)),
            pl.BlockSpec((1, D), lambda i: (0, 0)),
            pl.BlockSpec((1, D), lambda i: (0, 0)),
            pl.BlockSpec((1, D), lambda i: (0, 0)),
        ],
        out_specs=pl.BlockSpec((TM, D), lambda i: (i, 0)),
        out_shape=jax.ShapeDtypeStruct((M, D), f32),
        compiler_params=row_params,
    )(vec2, x2, wo_t,
      params["ln1_gamma"].astype(f32).reshape(1, D),
      params["ln1_beta"].astype(f32).reshape(1, D),
      w1_t, params["ff_b1"].astype(f32).reshape(1, Di),
      w2_t, params["ff_b2"].astype(f32).reshape(1, D),
      params["ln2_gamma"].astype(f32).reshape(1, D),
      params["ln2_beta"].astype(f32).reshape(1, D))

    ff_output = out2.reshape(B, Q, D).transpose(1, 0, 2)   # back to (qlen, bsz, d)
    outputs = [ff_output]
    if output_attentions:
        # TODO(synk): debug path -- XLA transpose to HF's (qlen, klen, bsz, n_head).
        outputs.append(attn_prob.transpose(2, 3, 0, 1))
    return outputs


# ----------------------------------------------------------------------------
# Pure-JAX reference (mirrors the PyTorch module line-by-line) for validation
# ----------------------------------------------------------------------------

def reference_forward(dec_inp, r, params, n_head, d_head, dec_attn_mask):
    Q, B, D = dec_inp.shape
    R = r.shape[0]
    H, Dh = n_head, d_head
    scale = 1.0 / d_head ** 0.5
    eps = float(params["layer_norm_epsilon"])

    w_heads = dec_inp @ params["w_qkv"].T
    r_head_k = (r @ params["w_r"].T).reshape(R, H, Dh)
    w_head_q, w_head_k, w_head_v = jnp.split(w_heads, 3, axis=-1)
    w_head_q = w_head_q.reshape(Q, B, H, Dh)
    w_head_k = w_head_k.reshape(Q, B, H, Dh)
    w_head_v = w_head_v.reshape(Q, B, H, Dh)

    AC = jnp.einsum("ibnd,jbnd->ijbn", w_head_q + params["r_w_bias"], w_head_k)
    BD = jnp.einsum("ibnd,jnd->ijbn", w_head_q + params["r_r_bias"], r_head_k)
    zp = jnp.zeros((Q, 1, B, H), BD.dtype)
    BD = jnp.concatenate([zp, BD], axis=1).reshape(R + 1, Q, B, H)[1:].reshape(Q, R, B, H)

    score = (AC + BD) * scale
    if dec_attn_mask is not None and float(dec_attn_mask.sum()) != 0.0:
        m = dec_attn_mask == 1
        score = jnp.where(m[:, :, :, None], jnp.finfo(jnp.float32).min, score)
    prob = jax.nn.softmax(score, axis=1)
    vec = jnp.einsum("ijbn,jbnd->ibnd", prob, w_head_v).reshape(Q, B, H * Dh)
    attn_out = vec @ params["w_o"].T

    def ln(x, g, b):
        mu = x.mean(-1, keepdims=True)
        var = ((x - mu) ** 2).mean(-1, keepdims=True)
        return (x - mu) / jnp.sqrt(var + eps) * g + b

    out1 = ln(dec_inp + attn_out, params["ln1_gamma"], params["ln1_beta"])
    h = jax.nn.relu(out1 @ params["ff_w1"].T + params["ff_b1"])
    core = h @ params["ff_w2"].T + params["ff_b2"]
    return ln(out1 + core, params["ln2_gamma"], params["ln2_beta"])


# ----------------------------------------------------------------------------

if __name__ == "__main__":
    n_head, d_model, d_head, d_inner = 4, 32, 8, 64
    qlen, bsz = 8, 2
    rlen = qlen

    key = jax.random.PRNGKey(0)
    ks = jax.random.split(key, 12)
    init = lambda k, shape: 0.1 * jax.random.normal(k, shape, dtype=jnp.float32)

    params = {
        "w_qkv": init(ks[0], (3 * n_head * d_head, d_model)),   # qkv_net.weight
        "w_r": init(ks[1], (n_head * d_head, d_model)),         # r_net.weight
        "w_o": init(ks[2], (d_model, n_head * d_head)),         # o_net.weight
        "r_w_bias": init(ks[3], (n_head, d_head)),
        "r_r_bias": init(ks[4], (n_head, d_head)),
        "ln1_gamma": jnp.ones((d_model,), jnp.float32),
        "ln1_beta": jnp.zeros((d_model,), jnp.float32),
        "ff_w1": init(ks[5], (d_inner, d_model)),
        "ff_b1": init(ks[6], (d_inner,)),
        "ff_w2": init(ks[7], (d_model, d_inner)),
        "ff_b2": init(ks[8], (d_model,)),
        "ln2_gamma": jnp.ones((d_model,), jnp.float32),
        "ln2_beta": jnp.zeros((d_model,), jnp.float32),
        "layer_norm_epsilon": 1e-5,
    }

    dec_inp = jax.random.normal(ks[9], (qlen, bsz, d_model), dtype=jnp.float32)
    r = jax.random.normal(ks[10], (rlen, d_model), dtype=jnp.float32)
    # standard Transfo-XL causal mask, shape (qlen, klen, 1)
    dec_attn_mask = jnp.triu(jnp.ones((qlen, qlen), jnp.float32), k=1)[:, :, None]

    ref = reference_forward(dec_inp, r, params, n_head, d_head, dec_attn_mask)

    # bf16-MXU path (the performance configuration)
    out_bf16 = rel_partial_learnable_decoder_layer(
        dec_inp, r, params, n_head=n_head, d_head=d_head,
        dec_attn_mask=dec_attn_mask)[0]
    out_bf16 = jax.block_until_ready(out_bf16)
    np.testing.assert_allclose(np.asarray(out_bf16), np.asarray(ref),
                               rtol=5e-2, atol=5e-2)

    # f32 path validates the exact algorithm (incl. in-kernel rel_shift, exact
    # softmax reciprocal) more tightly
    out_f32 = rel_partial_learnable_decoder_layer(
        dec_inp, r, params, n_head=n_head, d_head=d_head,
        dec_attn_mask=dec_attn_mask, compute_dtype=jnp.float32)[0]
    out_f32 = jax.block_until_ready(out_f32)
    np.testing.assert_allclose(np.asarray(out_f32), np.asarray(ref),
                               rtol=1e-2, atol=1e-2)

    print("KERNEL_OK")
</pallas_src>

<mosaic_0001>
module attributes {stable_mosaic.version = 11 : i64} {
  func.func @_qkv_kernel(%arg0: i32, %arg1: memref<16x32xbf16, #tpu.memory_space<vmem>>, %arg2: memref<32x32xbf16, #tpu.memory_space<vmem>>, %arg3: memref<32x32xbf16, #tpu.memory_space<vmem>>, %arg4: memref<32x32xbf16, #tpu.memory_space<vmem>>, %arg5: memref<16x32xbf16, #tpu.memory_space<vmem>>, %arg6: memref<16x32xbf16, #tpu.memory_space<vmem>>, %arg7: memref<16x32xbf16, #tpu.memory_space<vmem>>) attributes {dimension_semantics = [#tpu.dimension_semantics<parallel>], iteration_bounds = array<i64: 1>, scalar_prefetch = 0 : i64, scratch_operands = 0 : i64, tpu.core_type = #tpu.core_type<tc>, window_params = [{transform_indices = @transform_0, window_bounds = array<i64: 16, 32>}, {pipeline_mode = #tpu.pipeline_mode<synchronous>, transform_indices = @transform_1, window_bounds = array<i64: 32, 32>}, {pipeline_mode = #tpu.pipeline_mode<synchronous>, transform_indices = @transform_2, window_bounds = array<i64: 32, 32>}, {pipeline_mode = #tpu.pipeline_mode<synchronous>, transform_indices = @transform_3, window_bounds = array<i64: 32, 32>}, {transform_indices = @transform_4, window_bounds = array<i64: 16, 32>}, {transform_indices = @transform_5, window_bounds = array<i64: 16, 32>}, {transform_indices = @transform_6, window_bounds = array<i64: 16, 32>}]} {
    %c0 = arith.constant 0 : index
    %c0_0 = arith.constant 0 : index
    %0 = vector.load %arg1[%c0, %c0_0] : memref<16x32xbf16, #tpu.memory_space<vmem>>, vector<16x32xbf16>
    %c0_1 = arith.constant 0 : index
    %c0_2 = arith.constant 0 : index
    %1 = vector.load %arg2[%c0_1, %c0_2] : memref<32x32xbf16, #tpu.memory_space<vmem>>, vector<32x32xbf16>
    %cst = arith.constant dense<0.000000e+00> : vector<16x32xf32>
    %2 = tpu.matmul %0, %1, %cst {dimension_numbers = #tpu.dot_dimension_numbers<[1], [0], [0], [1], [0, 0, 1, 1], [], []>} : vector<16x32xbf16>, vector<32x32xbf16>, vector<16x32xf32> -> vector<16x32xf32>
    %3 = arith.truncf %2 : vector<16x32xf32> to vector<16x32xbf16>
    %c0_3 = arith.constant 0 : index
    %c0_4 = arith.constant 0 : index
    %4 = vector.load %arg5[%c0_3, %c0_4] : memref<16x32xbf16, #tpu.memory_space<vmem>>, vector<16x32xbf16>
    tpu.vector_store %arg5[%c0_3, %c0_4], %3 {strides = array<i32>} : memref<16x32xbf16, #tpu.memory_space<vmem>>, vector<16x32xbf16>,
    %c0_5 = arith.constant 0 : index
    %c0_6 = arith.constant 0 : index
    %5 = vector.load %arg3[%c0_5, %c0_6] : memref<32x32xbf16, #tpu.memory_space<vmem>>, vector<32x32xbf16>
    %cst_7 = arith.constant dense<0.000000e+00> : vector<16x32xf32>
    %6 = tpu.matmul %0, %5, %cst_7 {dimension_numbers = #tpu.dot_dimension_numbers<[1], [0], [0], [1], [0, 0, 1, 1], [], []>} : vector<16x32xbf16>, vector<32x32xbf16>, vector<16x32xf32> -> vector<16x32xf32>
    %7 = arith.truncf %6 : vector<16x32xf32> to vector<16x32xbf16>
    %c0_8 = arith.constant 0 : index
    %c0_9 = arith.constant 0 : index
    %8 = vector.load %arg6[%c0_8, %c0_9] : memref<16x32xbf16, #tpu.memory_space<vmem>>, vector<16x32xbf16>
    tpu.vector_store %arg6[%c0_8, %c0_9], %7 {strides = array<i32>} : memref<16x32xbf16, #tpu.memory_space<vmem>>, vector<16x32xbf16>,
    %c0_10 = arith.constant 0 : index
    %c0_11 = arith.constant 0 : index
    %9 = vector.load %arg4[%c0_10, %c0_11] : memref<32x32xbf16, #tpu.memory_space<vmem>>, vector<32x32xbf16>
    %cst_12 = arith.constant dense<0.000000e+00> : vector<16x32xf32>
    %10 = tpu.matmul %0, %9, %cst_12 {dimension_numbers = #tpu.dot_dimension_numbers<[1], [0], [0], [1], [0, 0, 1, 1], [], []>} : vector<16x32xbf16>, vector<32x32xbf16>, vector<16x32xf32> -> vector<16x32xf32>
    %11 = arith.truncf %10 : vector<16x32xf32> to vector<16x32xbf16>
    %c0_13 = arith.constant 0 : index
    %c0_14 = arith.constant 0 : index
    %12 = vector.load %arg7[%c0_13, %c0_14] : memref<16x32xbf16, #tpu.memory_space<vmem>>, vector<16x32xbf16>
    tpu.vector_store %arg7[%c0_13, %c0_14], %11 {strides = array<i32>} : memref<16x32xbf16, #tpu.memory_space<vmem>>, vector<16x32xbf16>,
    return
  }
  func.func @transform_0(%arg0: i32) -> (i32, i32) {
    %c0_i32 = arith.constant 0 : i32
    %c0_i32_0 = arith.constant 0 : i32
    return %arg0, %c0_i32 : i32, i32
  }
  func.func @transform_1(%arg0: i32) -> (i32, i32) {
    %c0_i32 = arith.constant 0 : i32
    %c0_i32_0 = arith.constant 0 : i32
    %c0_i32_1 = arith.constant 0 : i32
    return %c0_i32, %c0_i32_0 : i32, i32
  }
  func.func @transform_2(%arg0: i32) -> (i32, i32) {
    %c0_i32 = arith.constant 0 : i32
    %c0_i32_0 = arith.constant 0 : i32
    %c0_i32_1 = arith.constant 0 : i32
    return %c0_i32, %c0_i32_0 : i32, i32
  }
  func.func @transform_3(%arg0: i32) -> (i32, i32) {
    %c0_i32 = arith.constant 0 : i32
    %c0_i32_0 = arith.constant 0 : i32
    %c0_i32_1 = arith.constant 0 : i32
    return %c0_i32, %c0_i32_0 : i32, i32
  }
  func.func @transform_4(%arg0: i32) -> (i32, i32) {
    %c0_i32 = arith.constant 0 : i32
    %c0_i32_0 = arith.constant 0 : i32
    return %arg0, %c0_i32 : i32, i32
  }
  func.func @transform_5(%arg0: i32) -> (i32, i32) {
    %c0_i32 = arith.constant 0 : i32
    %c0_i32_0 = arith.constant 0 : i32
    return %arg0, %c0_i32 : i32, i32
  }
  func.func @transform_6(%arg0: i32) -> (i32, i32) {
    %c0_i32 = arith.constant 0 : i32
    %c0_i32_0 = arith.constant 0 : i32
    return %arg0, %c0_i32 : i32, i32
  }
}

</mosaic_0001>

<bundles_post_ra>
// kernel: tpu_custom_call.1
= control target key start
LH: loop header
LB: loop body
LE: loop exit
PB: predicated region body
PF: predicated region fallthrough
CT: control target
= control target key end

     0   :  { %12 = vsyncpa [#allocation3], 0  ;;  %s759_s0 = inlined_call_operand.hbm [shape: bf16[16,32], index: 0, kind: input, shape index: {}]   ;;  %s760_s1 = inlined_call_operand.hbm [shape: bf16[32,32], index: 1, kind: input, shape index: {}]   ;;  %s761_s2 = inlined_call_operand.hbm [shape: bf16[32,32], index: 2, kind: input, shape index: {}]   ;;  %s762_s3 = inlined_call_operand.hbm [shape: bf16[32,32], index: 3, kind: input, shape index: {}]   ;;  %s763_s4 = inlined_call_operand.hbm [shape: bf16[16,32], index: 4, kind: output, shape index: {0}]   ;;  %s764_s5 = inlined_call_operand.hbm [shape: bf16[16,32], index: 5, kind: output, shape index: {1}]   ;;  %s765_s6 = inlined_call_operand.hbm [shape: bf16[16,32], index: 6, kind: output, shape index: {2}]  }
   0x1   :  { %13 = vsyncpa [#allocation6], 0 }
   0x2   :  { %14 = vsyncpa [#allocation9], 0 }
   0x3   :  { %15 = vsyncpa [#allocation4], 0 }
   0x4   :  { %16 = vsyncpa [#allocation12], 0  ;;  %s578_s21 = smov [#allocation5]   ;;  %s579_s23 = smov [#allocation2]  }
   0x5   :  { %s34_s22 = sshll.u32 %s578_s21, 4  ;;  %s22_s24 = sshll.u32 %s579_s23, 4  ;;  %s35_s22 = int_to_ptr.vmem [resolvable:$true] %s34_s22  ;;  %s624_s24 = int_to_ptr.vmem [resolvable:$true] %s22_s24 }
   0x6   :  { %s414_s27 = scalar_lea.hbm %s760_s1, 256 }
   0x7   :  { %p415_p0 = scmp.ne.s32.totalorder %s760_s1, %s414_s27  ;;  %p418_p1 = scmp.lt.u32.totalorder %s414_s27, %s760_s1 }
   0x9   :  { %p420_p2 = pnand %p418_p1, %p415_p0 }
   0xb   :  { %423 = shalt.err (!%p420_p2)
}
   0xc   :  { %s424_s8 = scalar_lea.vmem %s35_s22, 256  ;;  %p429_p4 = scmp.lt.s32.totalorder %s35_s22, %s35_s22 }
   0xd   :  { %p425_p3 = scmp.ne.s32.totalorder %s35_s22, %s424_s8  ;;  %p430_p5 = scmp.lt.s32.totalorder %s424_s8, %s424_s8 }
   0xf   :  { %p431_p6 = por %p430_p5, %p429_p4 }
  0x11   :  { %p432_p7 = pnand %p431_p6, %p425_p3 }
  0x13   :  { %435 = shalt.err (!%p432_p7)
}
  0x14   :  { %s580_s9 = smov 64   ;;  %s581_s10 = smov 4  }
  0x15   :  { %40 = dma.hbm_to_vmem [thread:$0]  %s760_s1, 256, %s35_s22, [#allocation6], %s580_s9, %s580_s9, %s581_s10  }
  0x16   :  { %s436_s15 = scalar_lea.hbm %s759_s0, 128 }
  0x17   :  { %p437_p8 = scmp.ne.s32.totalorder %s759_s0, %s436_s15  ;;  %p440_p9 = scmp.lt.u32.totalorder %s436_s15, %s759_s0 }
  0x19   :  { %p442_p10 = pnand %p440_p9, %p437_p8 }
  0x1b   :  { %445 = shalt.err (!%p442_p10)
}
  0x1c   :  { %s446_s20 = scalar_lea.vmem %s624_s24, 128  ;;  %p451_p12 = scmp.lt.s32.totalorder %s624_s24, %s624_s24 }
  0x1d   :  { %p447_p11 = scmp.ne.s32.totalorder %s624_s24, %s446_s20  ;;  %p452_p13 = scmp.lt.s32.totalorder %s446_s20, %s446_s20 }
  0x1f   :  { %p453_p0 = por %p452_p13, %p451_p12 }
  0x21   :  { %p454_p1 = pnand %p453_p0, %p447_p11 }
  0x23   :  { %457 = shalt.err (!%p454_p1)
}
  0x24   :  { %28 = dma.hbm_to_vmem [thread:$0]  %s759_s0, 128, %s624_s24, [#allocation3], %s580_s9, %s580_s9, %s581_s10  }
  0x25   :  { %s582_s22 = smov [#allocation7]   ;;  %s583_s25 = smov [#allocation8]  }
  0x26   :  { %s46_s23 = sshll.u32 %s582_s22, 4  ;;  %s58_s26 = sshll.u32 %s583_s25, 4  ;;  %s47_s23 = int_to_ptr.vmem [resolvable:$true] %s46_s23  ;;  %s661_s26 = int_to_ptr.vmem [resolvable:$true] %s58_s26 }
  0x27   :  { %s458_s29 = scalar_lea.hbm %s761_s2, 256 }
  0x28   :  { %p459_p2 = scmp.ne.s32.totalorder %s761_s2, %s458_s29  ;;  %p462_p3 = scmp.lt.u32.totalorder %s458_s29, %s761_s2 }
  0x2a   :  { %p464_p4 = pnand %p462_p3, %p459_p2 }
  0x2c   :  { %467 = shalt.err (!%p464_p4)
}
  0x2d   :  { %s468_s0 = scalar_lea.vmem %s47_s23, 256  ;;  %p473_p6 = scmp.lt.s32.totalorder %s47_s23, %s47_s23 }
  0x2e   :  { %p469_p5 = scmp.ne.s32.totalorder %s47_s23, %s468_s0  ;;  %p474_p7 = scmp.lt.s32.totalorder %s468_s0, %s468_s0 }
  0x30   :  { %p475_p8 = por %p474_p7, %p473_p6 }
  0x32   :  { %p476_p9 = pnand %p475_p8, %p469_p5 }
  0x34   :  { %479 = shalt.err (!%p476_p9)
}
  0x35   :  { %52 = dma.hbm_to_vmem [thread:$0]  %s761_s2, 256, %s47_s23, [#allocation6], %s580_s9, %s580_s9, %s581_s10  }
  0x36   :  { %s480_s15 = scalar_lea.hbm %s762_s3, 256 }
  0x37   :  { %p481_p10 = scmp.ne.s32.totalorder %s762_s3, %s480_s15  ;;  %p484_p11 = scmp.lt.u32.totalorder %s480_s15, %s762_s3 }
  0x39   :  { %p486_p12 = pnand %p484_p11, %p481_p10 }
  0x3b   :  { %489 = shalt.err (!%p486_p12)
}
  0x3c   :  { %s490_s20 = scalar_lea.vmem %s661_s26, 256  ;;  %p495_p0 = scmp.lt.s32.totalorder %s661_s26, %s661_s26 }
  0x3d   :  { %p491_p13 = scmp.ne.s32.totalorder %s661_s26, %s490_s20  ;;  %p496_p1 = scmp.lt.s32.totalorder %s490_s20, %s490_s20 }
  0x3f   :  { %p497_p2 = por %p496_p1, %p495_p0 }
  0x41   :  { %p498_p3 = pnand %p497_p2, %p491_p13 }
  0x43   :  { %501 = shalt.err (!%p498_p3)
}
  0x44   :  { %64 = dma.hbm_to_vmem [thread:$0]  %s762_s3, 256, %s661_s26, [#allocation9], %s580_s9, %s580_s9, %s581_s10  }
  0x45   :  { %568 = dma.done.wait [#allocation3], 128  }
  0x46   :  { %569 = vsyncadd [#allocation3], 4294967168 }
  0x47   :  { %570 = dma.done.wait [#allocation6], 512  }
  0x48   :  { %571 = vsyncadd [#allocation6], 4294966784 }
  0x49   :  { %572 = dma.done.wait [#allocation9], 256  }
  0x4a   :  { %573 = vsyncadd [#allocation9], 4294967040  ;;  %v584_v0 = vmov 0.0   ;;  %vm585_vm0 = vmmov 0   ;;  %v407_v1 = vld [vmem:[#allocation5] sm:$0xff]   ;;  %v408_v2 = vld [vmem:[#allocation5 + $0x8] sm:$0xff]  }
  0x4b   :  { %372 = vmatprep.subr.bf16.mxu0 %v584_v0  ;;  %380 = vmatprep.subr.bf16.mxu1 %v584_v0  ;;  %v409_v3 = vld [vmem:[#allocation7] sm:$0xff]   ;;  %v410_v4 = vld [vmem:[#allocation2] sm:$0xff]   ;;  %vm101_vm1 = vcmask 261120   ;;  %v411_v6 = vld [vmem:[#allocation8] sm:$0xff]   ;;  %vm154_vm2 = vcmask 257024   ;;  %s586_s3 = smov [#allocation10]  }
  0x4c   :  { %376 = vmatprep.mubr.msk.bf16.mxu0 %vm585_vm0, %v584_v0  ;;  %384 = vmatprep.mubr.msk.bf16.mxu1 %vm585_vm0, %v584_v0  ;;  %v412_v5 = vld [vmem:[#allocation7 + $0x8] sm:$0xff]   ;;  %v413_v7 = vld [vmem:[#allocation8 + $0x8] sm:$0xff]   ;;  %s296_s21 = sshll.u32 %s586_s3, 4  ;;  %s587_s22 = smov [#allocation11]   ;;  %s297_s21 = int_to_ptr.vmem [resolvable:$true] %s296_s21 }
  0x4d   :  { %373 = vmatpush3.bf16.msra.mxu0 %v407_v1  ;;  %381 = vmatpush3.bf16.msra.mxu1 %v409_v3  ;;  %s308_s23 = sshll.u32 %s587_s22, 4  ;;  %s502_s25 = scalar_lea.vmem %s297_s21, 128  ;;  %s704_s23 = int_to_ptr.vmem [resolvable:$true] %s308_s23 }
  0x4e   :  { %374 = vmatprep.subr.bf16.mxu0 %v584_v0  ;;  %382 = vmatprep.subr.bf16.mxu1 %v584_v0  ;;  %p503_p4 = scmp.ne.s32.totalorder %s297_s21, %s502_s25  ;;  %p507_p5 = scmp.lt.s32.totalorder %s297_s21, %s297_s21 }
  0x4f   :  { %p508_p6 = scmp.lt.s32.totalorder %s502_s25, %s502_s25 }
  0x51   :  { %375 = vmatpush3.bf16.msra.mxu0 %v408_v2  ;;  %383 = vmatpush3.bf16.msra.mxu1 %v412_v5  ;;  %p509_p7 = por %p508_p6, %p507_p5 }
  0x52   :  { %388 = vmatprep.subr.bf16.mxu0 %v584_v0 }
  0x53   :  { %p510_p8 = pnand %p509_p7, %p503_p4 }
  0x54   :  { %377 = vmatmul.mubr.msk.bf16.vlgmr.msra.gmra.mrb[0].mxu0 %vm101_vm1, %v410_v4  ;;  %385 = vmatmul.mubr.msk.bf16.vlgmr.msra.gmra.mrb[0].mxu1 %vm101_vm1, %v410_v4 }
  0x55   :  { %389 = vmatpush3.bf16.msra.mxu0 %v411_v6  ;;  %392 = vmatprep.mubr.msk.bf16.mxu0 %vm585_vm0, %v584_v0 }
  0x56   :  { %390 = vmatprep.subr.bf16.mxu0 %v584_v0 }
  0x59   :  { %391 = vmatpush3.bf16.msra.mxu0 %v413_v7 }
  0x5c   :  { %393 = vmatmul.mubr.msk.bf16.vlgmr.msra.gmra.mrb[4].mxu0 %vm101_vm1, %v410_v4 }
 0x127   :  { %v139_v8 = vpop.f32.mrb[0].mxu0  ;;  %v207_v12 = vpop.f32.mrb[0].mxu1 }
 0x128   :  { %v357_v9 = vpack.c.bf16 %v139_v8, %v139_v8  ;;  %v378_v10 = vpop.f32.mrb[1].mxu0  ;;  %v359_v15 = vpack.c.bf16 %v207_v12, %v207_v12  ;;  %v386_v16 = vpop.f32.mrb[1].mxu1 }
 0x129   :  { %v142_v11 = vpop.f32.mrb[2].mxu0  ;;  %v210_v17 = vpop.f32.mrb[2].mxu1 }
 0x12a   :  { %v358_v13 = vpack.c.bf16 %v142_v11, %v142_v11  ;;  %v379_v14 = vpop.f32.mrb[3].mxu0  ;;  %155 = vst.msk [vmem:[#allocation10] sm:$0xf] %vm154_vm2, %v357_v9  ;;  %v360_v18 = vpack.c.bf16 %v210_v17, %v210_v17  ;;  %v387_v19 = vpop.f32.mrb[3].mxu1  ;;  %222 = vst.msk [vmem:[#allocation11] sm:$0xf] %vm154_vm2, %v359_v15 }
 0x12c   :  { %156 = vst.msk [vmem:[#allocation10 + $0x4] sm:$0xf] %vm154_vm2, %v358_v13 }
 0x12d   :  { %513 = shalt.err (!%p510_p8)
}
 0x12e   :  { %s514_s28 = scalar_lea.hbm %s763_s4, 128 }
 0x12f   :  { %p515_p9 = scmp.ne.s32.totalorder %s763_s4, %s514_s28  ;;  %p518_p10 = scmp.lt.u32.totalorder %s514_s28, %s763_s4 }
 0x131   :  { %p520_p11 = pnand %p518_p10, %p515_p9 }
 0x133   :  { %523 = shalt.err (!%p520_p11)
}
 0x134   :  { %302 = dma.vmem_to_hbm [thread:$0]  %s297_s21, 128, %s763_s4, [#allocation4], %s580_s9, %s580_s9, %s581_s10   ;;  %223 = vst.msk [vmem:[#allocation11 + $0x4] sm:$0xf] %vm154_vm2, %v360_v18  ;;  %v274_v20 = vpop.f32.mrb[4].mxu0 }
 0x135   :  { %s588_s24 = smov [#allocation13]   ;;  %s524_s13 = scalar_lea.vmem %s704_s23, 128 }
 0x136   :  { %s320_s12 = sshll.u32 %s588_s24, 4  ;;  %p525_p12 = scmp.ne.s32.totalorder %s704_s23, %s524_s13  ;;  %s321_s12 = int_to_ptr.vmem [resolvable:$true] %s320_s12 }
 0x137   :  { %p529_p13 = scmp.lt.s32.totalorder %s704_s23, %s704_s23  ;;  %p530_p0 = scmp.lt.s32.totalorder %s524_s13, %s524_s13 }
 0x139   :  { %p531_p1 = por %p530_p0, %p529_p13 }
 0x13b   :  { %p532_p2 = pnand %p531_p1, %p525_p12 }
 0x13d   :  { %535 = shalt.err (!%p532_p2)
}
 0x13e   :  { %s536_s16 = scalar_lea.hbm %s764_s5, 128 }
 0x13f   :  { %p537_p3 = scmp.ne.s32.totalorder %s764_s5, %s536_s16  ;;  %p540_p4 = scmp.lt.u32.totalorder %s536_s16, %s764_s5 }
 0x141   :  { %p542_p5 = pnand %p540_p4, %p537_p3 }
 0x143   :  { %545 = shalt.err (!%p542_p5)
}
 0x144   :  { %314 = dma.vmem_to_hbm [thread:$0]  %s704_s23, 128, %s764_s5, [#allocation12], %s580_s9, %s580_s9, %s581_s10   ;;  %v361_v21 = vpack.c.bf16 %v274_v20, %v274_v20  ;;  %v394_v22 = vpop.f32.mrb[5].mxu0 }
 0x145   :  { %v277_v23 = vpop.f32.mrb[6].mxu0  ;;  %s546_s1 = scalar_lea.vmem %s321_s12, 128  ;;  %p551_p7 = scmp.lt.s32.totalorder %s321_s12, %s321_s12 }
 0x146   :  { %289 = vst.msk [vmem:[#allocation13] sm:$0xf] %vm154_vm2, %v361_v21  ;;  %v362_v24 = vpack.c.bf16 %v277_v23, %v277_v23  ;;  %v395_v25 = vpop.f32.mrb[7].mxu0  ;;  %p547_p6 = scmp.ne.s32.totalorder %s321_s12, %s546_s1  ;;  %p552_p8 = scmp.lt.s32.totalorder %s546_s1, %s546_s1 }
 0x148   :  { %290 = vst.msk [vmem:[#allocation13 + $0x4] sm:$0xf] %vm154_vm2, %v362_v24  ;;  %p553_p9 = por %p552_p8, %p551_p7 }
 0x14a   :  { %p554_p10 = pnand %p553_p9, %p547_p6 }
 0x14c   :  { %557 = shalt.err (!%p554_p10)
}
 0x14d   :  { %s558_s5 = scalar_lea.hbm %s765_s6, 128 }
 0x14e   :  { %p559_p11 = scmp.ne.s32.totalorder %s765_s6, %s558_s5  ;;  %p562_p12 = scmp.lt.u32.totalorder %s558_s5, %s765_s6 }
 0x150   :  { %p564_p13 = pnand %p562_p12, %p559_p11 }
 0x152   :  { %567 = shalt.err (!%p564_p13)
}
 0x153   :  { %326 = dma.vmem_to_hbm [thread:$0]  %s321_s12, 128, %s765_s6, [#allocation12], %s580_s9, %s580_s9, %s581_s10  }
 0x154   :  { %574 = dma.done.wait [#allocation4], 128  }
 0x155   :  { %575 = vsyncadd [#allocation4], 4294967168 }
 0x156   :  { %576 = dma.done.wait [#allocation12], 256  }
 0x157   :  { %577 = vsyncadd [#allocation12], 4294967040 }
 0x158   :  { %336 = vsyncpa [#allocation3], 1 }
 0x159   :  { %337 = vsyncpa [#allocation6], 1 }
 0x15a   :  { %338 = vsyncpa [#allocation9], 1 }
 0x15b   :  { %339 = vsyncpa [#allocation4], 1 }
 0x15c   :  { %340 = vsyncpa [#allocation12], 1 }

</bundles_post_ra>
